<compile_context>
chip_gen: v7x
topology: tpu7x:2x2x1
jax: 0.10.0
libtpu: 0.0.40
codegen_flags: <defaults>
</compile_context>

<pallas_src>
import functools

import jax
import jax.numpy as jnp
from jax.experimental import pallas as pl
from jax.experimental.pallas import tpu as pltpu


def _vflip_kernel(flag_ref, x_ref, o_ref, *, th: int):
    """Conditionally reverse the row (sublane) axis of one block.

    flag_ref: SMEM (1,) int32 scalar-prefetch flag -- 1 = flip, 0 = passthrough.
    x_ref:    VMEM (TNC, TH, W).  When flipping, this is already the *mirrored*
              H-block (the BlockSpec index_map handled the coarse permutation),
              so only the intra-block row reversal remains.
    o_ref:    VMEM (TNC, TH, W).
    """
    flip = flag_ref[0] != 0

    @pl.when(flip)
    def _():
        blk = x_ref[...]
        # Static, unrolled intra-block row reversal (sublane shuffle).
        for r in range(th):
            o_ref[:, r:r + 1, :] = blk[:, th - 1 - r:th - r, :]

    @pl.when(jnp.logical_not(flip))
    def _():
        o_ref[...] = x_ref[...]


def _pick_row_tile(h: int) -> int:
    """Largest multiple-of-8 divisor of H (capped) to keep sublanes dense."""
    for th in (64, 56, 48, 40, 32, 24, 16, 8):
        if h % th == 0:
            return th
    return h  # H not a multiple of 8: use the whole axis as one block.


def _pick_nc_tile(nc: int) -> int:
    for t in (256, 128, 64, 32, 16, 8):
        if nc % t == 0:
            return t
    return nc


def vflip_pallas(img: jax.Array, flip_flag) -> jax.Array:
    """Returns F.vflip(img) if flip_flag else img, for [..., H, W] tensors."""
    *lead, H, W = img.shape
    nc = 1
    for d in lead:
        nc *= d
    x = img.reshape(nc, H, W)

    th = _pick_row_tile(H)
    tnc = _pick_nc_tile(nc)
    n_hblk = H // th

    flag = jnp.asarray(flip_flag, jnp.int32).reshape(1)

    def x_map(i, j, flag_ref):
        # Source H-block = (n_hblk - 1 - j) when flipping else j.
        # Pure integer arithmetic:  j + flag * (n_hblk - 1 - 2*j).
        return (i, j + flag_ref[0] * (n_hblk - 1 - 2 * j), 0)

    def o_map(i, j, flag_ref):
        return (i, j, 0)

    out = pl.pallas_call(
        functools.partial(_vflip_kernel, th=th),
        out_shape=jax.ShapeDtypeStruct((nc, H, W), x.dtype),
        grid_spec=pltpu.PrefetchScalarGridSpec(
            num_scalar_prefetch=1,
            grid=(nc // tnc, n_hblk),
            in_specs=[pl.BlockSpec((tnc, th, W), x_map)],
            out_specs=pl.BlockSpec((tnc, th, W), o_map),
        ),
        compiler_params=pltpu.CompilerParams(
            dimension_semantics=("parallel", "parallel"),
        ),
    )(flag, x)

    return out.reshape(img.shape)


class RandomVerticalFlip:
    """JAX/Pallas port of the PyTorch RandomVerticalFlip module.

    PyTorch's implicit torch.rand(1) draw needs an explicit PRNG key in JAX,
    so __call__ takes (img, key) and returns (maybe_flipped_img, flag).
    """

    def __init__(self, p: float = 0.5):
        self.p = float(p)

    def __call__(self, img, key):
        flip = jax.random.uniform(key, (), dtype=jnp.float32) < self.p
        flag = flip.astype(jnp.int32)
        # TODO(synk): PIL Image inputs are not supported; tensor [..., H, W] only.
        return vflip_pallas(img, flag), flag


if __name__ == "__main__":
    key = jax.random.PRNGKey(0)
    k_img, k_flip = jax.random.split(key)

    img = jax.random.normal(k_img, (2, 4, 16, 16), dtype=jnp.float32)

    # Exercise both branches deterministically.
    flipped = vflip_pallas(img, 1)
    same = vflip_pallas(img, 0)
    jax.block_until_ready((flipped, same))
    assert jnp.array_equal(flipped, img[..., ::-1, :])
    assert jnp.array_equal(same, img)

    # Module path with the random coin flip.
    module = RandomVerticalFlip(p=0.5)
    out, flag = module(img, k_flip)
    jax.block_until_ready(out)
    expected = jnp.where(flag != 0, img[..., ::-1, :], img)
    assert out.shape == img.shape and out.dtype == img.dtype
    assert jnp.array_equal(out, expected)

    print("KERNEL_OK")
</pallas_src>

<mosaic_0001>
module attributes {stable_mosaic.version = 11 : i64} {
  func.func @_vflip_kernel(%arg0: i32, %arg1: i32, %arg2: memref<1xi32, #tpu.memory_space<smem>>, %arg3: memref<8x16x16xf32, #tpu.memory_space<vmem>>, %arg4: memref<8x16x16xf32, #tpu.memory_space<vmem>>) attributes {dimension_semantics = [#tpu.dimension_semantics<parallel>, #tpu.dimension_semantics<parallel>], iteration_bounds = array<i64: 1, 1>, scalar_prefetch = 1 : i64, scratch_operands = 0 : i64, tpu.core_type = #tpu.core_type<tc>, window_params = [{transform_indices = @transform_0, window_bounds = array<i64: 8, 16, 16>}, {transform_indices = @transform_1, window_bounds = array<i64: 8, 16, 16>}]} {
    %c0 = arith.constant 0 : index
    %0 = memref.load %arg2[%c0] : memref<1xi32, #tpu.memory_space<smem>>
    %c0_i32 = arith.constant 0 : i32
    %1 = arith.cmpi ne, %0, %c0_i32 : i32
    %2 = arith.extui %1 : i1 to i32
    %c0_i32_0 = arith.constant 0 : i32
    %3 = arith.cmpi ne, %2, %c0_i32_0 : i32
    scf.if %3 {
      %c0_2 = arith.constant 0 : index
      %c0_3 = arith.constant 0 : index
      %c0_4 = arith.constant 0 : index
      %7 = vector.load %arg3[%c0_2, %c0_3, %c0_4] : memref<8x16x16xf32, #tpu.memory_space<vmem>>, vector<8x16x16xf32>
      %8 = vector.extract_strided_slice %7 {offsets = [0, 15, 0], sizes = [8, 1, 16], strides = [1, 1, 1]} : vector<8x16x16xf32> to vector<8x1x16xf32>
      %c0_5 = arith.constant 0 : index
      %c0_6 = arith.constant 0 : index
      %c0_7 = arith.constant 0 : index
      %9 = vector.load %arg4[%c0_5, %c0_6, %c0_7] : memref<8x16x16xf32, #tpu.memory_space<vmem>>, vector<8x1x16xf32>
      tpu.vector_store %arg4[%c0_5, %c0_6, %c0_7], %8 {strides = array<i32>} : memref<8x16x16xf32, #tpu.memory_space<vmem>>, vector<8x1x16xf32>,
      %10 = vector.extract_strided_slice %7 {offsets = [0, 14, 0], sizes = [8, 1, 16], strides = [1, 1, 1]} : vector<8x16x16xf32> to vector<8x1x16xf32>
      %c0_8 = arith.constant 0 : index
      %c1 = arith.constant 1 : index
      %c0_9 = arith.constant 0 : index
      %11 = vector.load %arg4[%c0_8, %c1, %c0_9] : memref<8x16x16xf32, #tpu.memory_space<vmem>>, vector<8x1x16xf32>
      tpu.vector_store %arg4[%c0_8, %c1, %c0_9], %10 {strides = array<i32>} : memref<8x16x16xf32, #tpu.memory_space<vmem>>, vector<8x1x16xf32>,
      %12 = vector.extract_strided_slice %7 {offsets = [0, 13, 0], sizes = [8, 1, 16], strides = [1, 1, 1]} : vector<8x16x16xf32> to vector<8x1x16xf32>
      %c0_10 = arith.constant 0 : index
      %c2 = arith.constant 2 : index
      %c0_11 = arith.constant 0 : index
      %13 = vector.load %arg4[%c0_10, %c2, %c0_11] : memref<8x16x16xf32, #tpu.memory_space<vmem>>, vector<8x1x16xf32>
      tpu.vector_store %arg4[%c0_10, %c2, %c0_11], %12 {strides = array<i32>} : memref<8x16x16xf32, #tpu.memory_space<vmem>>, vector<8x1x16xf32>,
      %14 = vector.extract_strided_slice %7 {offsets = [0, 12, 0], sizes = [8, 1, 16], strides = [1, 1, 1]} : vector<8x16x16xf32> to vector<8x1x16xf32>
      %c0_12 = arith.constant 0 : index
      %c3 = arith.constant 3 : index
      %c0_13 = arith.constant 0 : index
      %15 = vector.load %arg4[%c0_12, %c3, %c0_13] : memref<8x16x16xf32, #tpu.memory_space<vmem>>, vector<8x1x16xf32>
      tpu.vector_store %arg4[%c0_12, %c3, %c0_13], %14 {strides = array<i32>} : memref<8x16x16xf32, #tpu.memory_space<vmem>>, vector<8x1x16xf32>,
      %16 = vector.extract_strided_slice %7 {offsets = [0, 11, 0], sizes = [8, 1, 16], strides = [1, 1, 1]} : vector<8x16x16xf32> to vector<8x1x16xf32>
      %c0_14 = arith.constant 0 : index
      %c4 = arith.constant 4 : index
      %c0_15 = arith.constant 0 : index
      %17 = vector.load %arg4[%c0_14, %c4, %c0_15] : memref<8x16x16xf32, #tpu.memory_space<vmem>>, vector<8x1x16xf32>
      tpu.vector_store %arg4[%c0_14, %c4, %c0_15], %16 {strides = array<i32>} : memref<8x16x16xf32, #tpu.memory_space<vmem>>, vector<8x1x16xf32>,
      %18 = vector.extract_strided_slice %7 {offsets = [0, 10, 0], sizes = [8, 1, 16], strides = [1, 1, 1]} : vector<8x16x16xf32> to vector<8x1x16xf32>
      %c0_16 = arith.constant 0 : index
      %c5 = arith.constant 5 : index
      %c0_17 = arith.constant 0 : index
      %19 = vector.load %arg4[%c0_16, %c5, %c0_17] : memref<8x16x16xf32, #tpu.memory_space<vmem>>, vector<8x1x16xf32>
      tpu.vector_store %arg4[%c0_16, %c5, %c0_17], %18 {strides = array<i32>} : memref<8x16x16xf32, #tpu.memory_space<vmem>>, vector<8x1x16xf32>,
      %20 = vector.extract_strided_slice %7 {offsets = [0, 9, 0], sizes = [8, 1, 16], strides = [1, 1, 1]} : vector<8x16x16xf32> to vector<8x1x16xf32>
      %c0_18 = arith.constant 0 : index
      %c6 = arith.constant 6 : index
      %c0_19 = arith.constant 0 : index
      %21 = vector.load %arg4[%c0_18, %c6, %c0_19] : memref<8x16x16xf32, #tpu.memory_space<vmem>>, vector<8x1x16xf32>
      tpu.vector_store %arg4[%c0_18, %c6, %c0_19], %20 {strides = array<i32>} : memref<8x16x16xf32, #tpu.memory_space<vmem>>, vector<8x1x16xf32>,
      %22 = vector.extract_strided_slice %7 {offsets = [0, 8, 0], sizes = [8, 1, 16], strides = [1, 1, 1]} : vector<8x16x16xf32> to vector<8x1x16xf32>
      %c0_20 = arith.constant 0 : index
      %c7 = arith.constant 7 : index
      %c0_21 = arith.constant 0 : index
      %23 = vector.load %arg4[%c0_20, %c7, %c0_21] : memref<8x16x16xf32, #tpu.memory_space<vmem>>, vector<8x1x16xf32>
      tpu.vector_store %arg4[%c0_20, %c7, %c0_21], %22 {strides = array<i32>} : memref<8x16x16xf32, #tpu.memory_space<vmem>>, vector<8x1x16xf32>,
      %24 = vector.extract_strided_slice %7 {offsets = [0, 7, 0], sizes = [8, 1, 16], strides = [1, 1, 1]} : vector<8x16x16xf32> to vector<8x1x16xf32>
      %c0_22 = arith.constant 0 : index
      %c8 = arith.constant 8 : index
      %c0_23 = arith.constant 0 : index
      %25 = vector.load %arg4[%c0_22, %c8, %c0_23] : memref<8x16x16xf32, #tpu.memory_space<vmem>>, vector<8x1x16xf32>
      tpu.vector_store %arg4[%c0_22, %c8, %c0_23], %24 {strides = array<i32>} : memref<8x16x16xf32, #tpu.memory_space<vmem>>, vector<8x1x16xf32>,
      %26 = vector.extract_strided_slice %7 {offsets = [0, 6, 0], sizes = [8, 1, 16], strides = [1, 1, 1]} : vector<8x16x16xf32> to vector<8x1x16xf32>
      %c0_24 = arith.constant 0 : index
      %c9 = arith.constant 9 : index
      %c0_25 = arith.constant 0 : index
      %27 = vector.load %arg4[%c0_24, %c9, %c0_25] : memref<8x16x16xf32, #tpu.memory_space<vmem>>, vector<8x1x16xf32>
      tpu.vector_store %arg4[%c0_24, %c9, %c0_25], %26 {strides = array<i32>} : memref<8x16x16xf32, #tpu.memory_space<vmem>>, vector<8x1x16xf32>,
      %28 = vector.extract_strided_slice %7 {offsets = [0, 5, 0], sizes = [8, 1, 16], strides = [1, 1, 1]} : vector<8x16x16xf32> to vector<8x1x16xf32>
      %c0_26 = arith.constant 0 : index
      %c10 = arith.constant 10 : index
      %c0_27 = arith.constant 0 : index
      %29 = vector.load %arg4[%c0_26, %c10, %c0_27] : memref<8x16x16xf32, #tpu.memory_space<vmem>>, vector<8x1x16xf32>
      tpu.vector_store %arg4[%c0_26, %c10, %c0_27], %28 {strides = array<i32>} : memref<8x16x16xf32, #tpu.memory_space<vmem>>, vector<8x1x16xf32>,
      %30 = vector.extract_strided_slice %7 {offsets = [0, 4, 0], sizes = [8, 1, 16], strides = [1, 1, 1]} : vector<8x16x16xf32> to vector<8x1x16xf32>
      %c0_28 = arith.constant 0 : index
      %c11 = arith.constant 11 : index
      %c0_29 = arith.constant 0 : index
      %31 = vector.load %arg4[%c0_28, %c11, %c0_29] : memref<8x16x16xf32, #tpu.memory_space<vmem>>, vector<8x1x16xf32>
      tpu.vector_store %arg4[%c0_28, %c11, %c0_29], %30 {strides = array<i32>} : memref<8x16x16xf32, #tpu.memory_space<vmem>>, vector<8x1x16xf32>,
      %32 = vector.extract_strided_slice %7 {offsets = [0, 3, 0], sizes = [8, 1, 16], strides = [1, 1, 1]} : vector<8x16x16xf32> to vector<8x1x16xf32>
      %c0_30 = arith.constant 0 : index
      %c12 = arith.constant 12 : index
      %c0_31 = arith.constant 0 : index
      %33 = vector.load %arg4[%c0_30, %c12, %c0_31] : memref<8x16x16xf32, #tpu.memory_space<vmem>>, vector<8x1x16xf32>
      tpu.vector_store %arg4[%c0_30, %c12, %c0_31], %32 {strides = array<i32>} : memref<8x16x16xf32, #tpu.memory_space<vmem>>, vector<8x1x16xf32>,
      %34 = vector.extract_strided_slice %7 {offsets = [0, 2, 0], sizes = [8, 1, 16], strides = [1, 1, 1]} : vector<8x16x16xf32> to vector<8x1x16xf32>
      %c0_32 = arith.constant 0 : index
      %c13 = arith.constant 13 : index
      %c0_33 = arith.constant 0 : index
      %35 = vector.load %arg4[%c0_32, %c13, %c0_33] : memref<8x16x16xf32, #tpu.memory_space<vmem>>, vector<8x1x16xf32>
      tpu.vector_store %arg4[%c0_32, %c13, %c0_33], %34 {strides = array<i32>} : memref<8x16x16xf32, #tpu.memory_space<vmem>>, vector<8x1x16xf32>,
      %36 = vector.extract_strided_slice %7 {offsets = [0, 1, 0], sizes = [8, 1, 16], strides = [1, 1, 1]} : vector<8x16x16xf32> to vector<8x1x16xf32>
      %c0_34 = arith.constant 0 : index
      %c14 = arith.constant 14 : index
      %c0_35 = arith.constant 0 : index
      %37 = vector.load %arg4[%c0_34, %c14, %c0_35] : memref<8x16x16xf32, #tpu.memory_space<vmem>>, vector<8x1x16xf32>
      tpu.vector_store %arg4[%c0_34, %c14, %c0_35], %36 {strides = array<i32>} : memref<8x16x16xf32, #tpu.memory_space<vmem>>, vector<8x1x16xf32>,
      %38 = vector.extract_strided_slice %7 {offsets = [0, 0, 0], sizes = [8, 1, 16], strides = [1, 1, 1]} : vector<8x16x16xf32> to vector<8x1x16xf32>
      %c0_36 = arith.constant 0 : index
      %c15 = arith.constant 15 : index
      %c0_37 = arith.constant 0 : index
      %39 = vector.load %arg4[%c0_36, %c15, %c0_37] : memref<8x16x16xf32, #tpu.memory_space<vmem>>, vector<8x1x16xf32>
      tpu.vector_store %arg4[%c0_36, %c15, %c0_37], %38 {strides = array<i32>} : memref<8x16x16xf32, #tpu.memory_space<vmem>>, vector<8x1x16xf32>,
    } else {
    }
    %true = arith.constant true
    %4 = arith.xori %1, %true : i1
    %5 = arith.extui %4 : i1 to i32
    %c0_i32_1 = arith.constant 0 : i32
    %6 = arith.cmpi ne, %5, %c0_i32_1 : i32
    scf.if %6 {
      %c0_2 = arith.constant 0 : index
      %c0_3 = arith.constant 0 : index
      %c0_4 = arith.constant 0 : index
      %7 = vector.load %arg3[%c0_2, %c0_3, %c0_4] : memref<8x16x16xf32, #tpu.memory_space<vmem>>, vector<8x16x16xf32>
      %c0_5 = arith.constant 0 : index
      %c0_6 = arith.constant 0 : index
      %c0_7 = arith.constant 0 : index
      %8 = vector.load %arg4[%c0_5, %c0_6, %c0_7] : memref<8x16x16xf32, #tpu.memory_space<vmem>>, vector<8x16x16xf32>
      tpu.vector_store %arg4[%c0_5, %c0_6, %c0_7], %7 {strides = array<i32>} : memref<8x16x16xf32, #tpu.memory_space<vmem>>, vector<8x16x16xf32>,
    } else {
    }
    return
  }
  func.func @transform_0(%arg0: i32, %arg1: i32, %arg2: memref<1xi32, #tpu.memory_space<smem>>) -> (i32, i32, i32) {
    %c0 = arith.constant 0 : index
    %0 = memref.load %arg2[%c0] : memref<1xi32, #tpu.memory_space<smem>>
    %c2_i32 = arith.constant 2 : i32
    %1 = arith.muli %c2_i32, %arg1 : i32
    %c0_i32 = arith.constant 0 : i32
    %2 = arith.subi %c0_i32, %1 : i32
    %3 = arith.muli %0, %2 : i32
    %4 = arith.addi %arg1, %3 : i32
    %c0_i32_0 = arith.constant 0 : i32
    %c0_i32_1 = arith.constant 0 : i32
    return %arg0, %4, %c0_i32_0 : i32, i32, i32
  }
  func.func @transform_1(%arg0: i32, %arg1: i32, %arg2: memref<1xi32, #tpu.memory_space<smem>>) -> (i32, i32, i32) {
    %c0_i32 = arith.constant 0 : i32
    %c0_i32_0 = arith.constant 0 : i32
    return %arg0, %arg1, %c0_i32 : i32, i32, i32
  }
}

</mosaic_0001>

<bundles_post_ra>
// kernel: tpu_custom_call.1
= control target key start
LH: loop header
LB: loop body
LE: loop exit
PB: predicated region body
PF: predicated region fallthrough
CT: control target
= control target key end

     0   :  { %8 = vsyncpa [#allocation5], 0  ;;  %s565_s0 = inlined_call_operand.<no memory space> [shape: s32[1], index: 0, kind: input, shape index: {}]   ;;  %s566_s1 = inlined_call_operand.hbm [shape: f32[8,16,16], index: 1, kind: input, shape index: {}]   ;;  %s567_s2 = inlined_call_operand.hbm [shape: f32[8,16,16], index: 2, kind: output, shape index: {}]  }
   0x1   :  { %9 = vsyncpa [#allocation6], 0  ;;  %s306_s9 = smov [#allocation4]   ;;  %s258_s13 = scalar_lea.hbm %s566_s1, 2048 }
   0x2   :  { %s23_s10 = sshll.u32 %s306_s9, 4  ;;  %p259_p0 = scmp.ne.s32.totalorder %s566_s1, %s258_s13  ;;  %s24_s10 = int_to_ptr.vmem [resolvable:$true] %s23_s10 }
   0x3   :  { %p262_p1 = scmp.lt.u32.totalorder %s258_s13, %s566_s1 }
   0x5   :  { %p264_p2 = pnand %p262_p1, %p259_p0 }
   0x7   :  { %267 = shalt.err (!%p264_p2)
}
   0x8   :  { %s268_s18 = scalar_lea.vmem %s24_s10, 2048  ;;  %p273_p4 = scmp.lt.s32.totalorder %s24_s10, %s24_s10 }
   0x9   :  { %p269_p3 = scmp.ne.s32.totalorder %s24_s10, %s268_s18  ;;  %p274_p5 = scmp.lt.s32.totalorder %s268_s18, %s268_s18 }
   0xb   :  { %p275_p6 = por %p274_p5, %p273_p4 }
   0xd   :  { %p276_p7 = pnand %p275_p6, %p269_p3 }
   0xf   :  { %279 = shalt.err (!%p276_p7)
}
  0x10   :  { %s307_s19 = smov 128   ;;  %s308_s20 = smov 8  }
  0x11   :  { %29 = dma.hbm_to_vmem [thread:$0]  %s566_s1, 2048, %s24_s10, [#allocation5], %s307_s19, %s307_s19, %s308_s20  }
  0x12   :  { %302 = dma.done.wait [#allocation5], 2048  }
  0x13   :  { %303 = vsyncadd [#allocation5], 4294965248  ;;  %p252_p8 = scmp.eq.s32.totalorder %s565_s0, 0 }
  0x14   :  { %v343_v0 = vld [vmem:[#allocation4 + $0x8] sm:$0xff] (!%p252_p8)  ;;  %vm60_vm0 = vcmask (!%p252_p8), 130055   ;;  %v345_v1 = vld [vmem:[#allocation4 + $0x18] sm:$0xff] (!%p252_p8)  ;;  %vm69_vm1 = vcmask (!%p252_p8), 129030   ;;  %vm78_vm2 = vcmask (!%p252_p8), 128005   ;;  %vm87_vm3 = vcmask (!%p252_p8), 126980  }
  0x15   :  { %43 = sbr.rel (%p252_p8) target bundleno = 86 (0x56), region = 13  ;;  %v347_v2 = vld [vmem:[#allocation4 + $0x28] sm:$0xff] (!%p252_p8)  ;;  %61 = vst.msk [vmem:[#allocation7 - $0x7] sm:$0x80] (!%p252_p8), %vm60_vm0, %v343_v0  ;;  %62 = vst.msk [vmem:[#allocation7 + $0x9] sm:$0x80] (!%p252_p8), %vm60_vm0, %v345_v1 }
  0x16   :  { %63 = vst.msk [vmem:[#allocation7 + $0x19] sm:$0x80] (!%p252_p8), %vm60_vm0, %v347_v2  ;;  %v355_v3 = vld [vmem:[#allocation4 + $0x38] sm:$0xff] (!%p252_p8)  ;;  %v357_v4 = vld [vmem:[#allocation4 + $0x48] sm:$0xff] (!%p252_p8)  ;;  %vm96_vm4 = vcmask (!%p252_p8), 125955   ;;  %vm105_vm5 = vcmask (!%p252_p8), 124930  }
  0x17   :  { %v359_v5 = vld [vmem:[#allocation4 + $0x58] sm:$0xff] (!%p252_p8)  ;;  %70 = vst.msk [vmem:[#allocation7 - $0x5] sm:$0x40] (!%p252_p8), %vm69_vm1, %v343_v0  ;;  %71 = vst.msk [vmem:[#allocation7 + $0xb] sm:$0x40] (!%p252_p8), %vm69_vm1, %v345_v1  ;;  %v57_v6 = vld [vmem:[#allocation4 + $0x68] sm:$0xff] (!%p252_p8) }
  0x18   :  { %72 = vst.msk [vmem:[#allocation7 + $0x1b] sm:$0x40] (!%p252_p8), %vm69_vm1, %v347_v2  ;;  %v59_v7 = vld [vmem:[#allocation4 + $0x78] sm:$0xff] (!%p252_p8)  ;;  %73 = vst.msk [vmem:[#allocation7 + $0x2b] sm:$0x40] (!%p252_p8), %vm69_vm1, %v355_v3  ;;  %vm114_vm6 = vcmask (!%p252_p8), 123905  }
  0x19   :  { %79 = vst.msk [vmem:[#allocation7 - $0x3] sm:$0x20] (!%p252_p8), %vm78_vm2, %v343_v0  ;;  %80 = vst.msk [vmem:[#allocation7 + $0xd] sm:$0x20] (!%p252_p8), %vm78_vm2, %v345_v1  ;;  %vm123_vm7 = vcmask (!%p252_p8), 122880   ;;  %v44_v8 = vld [vmem:[#allocation4] sm:$0xff] (!%p252_p8) }
  0x1a   :  { %81 = vst.msk [vmem:[#allocation7 + $0x1d] sm:$0x20] (!%p252_p8), %vm78_vm2, %v347_v2  ;;  %82 = vst.msk [vmem:[#allocation7 + $0x2d] sm:$0x20] (!%p252_p8), %vm78_vm2, %v355_v3  ;;  %v46_v9 = vld [vmem:[#allocation4 + $0x10] sm:$0xff] (!%p252_p8)  ;;  %v48_v10 = vld [vmem:[#allocation4 + $0x20] sm:$0xff] (!%p252_p8) }
  0x1b   :  { %64 = vst.msk [vmem:[#allocation7 + $0x29] sm:$0x80] (!%p252_p8), %vm60_vm0, %v355_v3  ;;  %65 = vst.msk [vmem:[#allocation7 + $0x39] sm:$0x80] (!%p252_p8), %vm60_vm0, %v357_v4  ;;  %v50_v11 = vld [vmem:[#allocation4 + $0x30] sm:$0xff] (!%p252_p8)  ;;  %v52_v12 = vld [vmem:[#allocation4 + $0x40] sm:$0xff] (!%p252_p8) }
  0x1c   :  { %66 = vst.msk [vmem:[#allocation7 + $0x49] sm:$0x80] %vm60_vm0, %v359_v5  ;;  %67 = vst.msk [vmem:[#allocation7 + $0x59] sm:$0x80] %vm60_vm0, %v57_v6  ;;  %v54_v13 = vld [vmem:[#allocation4 + $0x50] sm:$0xff]  ;;  %v56_v14 = vld [vmem:[#allocation4 + $0x60] sm:$0xff] }
  0x1d   :  { %74 = vst.msk [vmem:[#allocation7 + $0x3b] sm:$0x40] %vm69_vm1, %v357_v4  ;;  %75 = vst.msk [vmem:[#allocation7 + $0x4b] sm:$0x40] %vm69_vm1, %v359_v5  ;;  %v58_v15 = vld [vmem:[#allocation4 + $0x70] sm:$0xff] }
  0x1e   :  { %83 = vst.msk [vmem:[#allocation7 + $0x3d] sm:$0x20] %vm78_vm2, %v357_v4  ;;  %84 = vst.msk [vmem:[#allocation7 + $0x4d] sm:$0x20] %vm78_vm2, %v359_v5 }
  0x1f   :  { %88 = vst.msk [vmem:[#allocation7 - $0x1] sm:$0x10] %vm87_vm3, %v343_v0  ;;  %89 = vst.msk [vmem:[#allocation7 + $0xf] sm:$0x10] %vm87_vm3, %v345_v1 }
  0x20   :  { %90 = vst.msk [vmem:[#allocation7 + $0x1f] sm:$0x10] %vm87_vm3, %v347_v2  ;;  %91 = vst.msk [vmem:[#allocation7 + $0x2f] sm:$0x10] %vm87_vm3, %v355_v3 }
  0x21   :  { %92 = vst.msk [vmem:[#allocation7 + $0x3f] sm:$0x10] %vm87_vm3, %v357_v4  ;;  %93 = vst.msk [vmem:[#allocation7 + $0x4f] sm:$0x10] %vm87_vm3, %v359_v5 }
  0x22   :  { %97 = vst.msk [vmem:[#allocation7 + $0x1] sm:$0x8] %vm96_vm4, %v343_v0  ;;  %98 = vst.msk [vmem:[#allocation7 + $0x11] sm:$0x8] %vm96_vm4, %v345_v1 }
  0x23   :  { %99 = vst.msk [vmem:[#allocation7 + $0x21] sm:$0x8] %vm96_vm4, %v347_v2  ;;  %100 = vst.msk [vmem:[#allocation7 + $0x31] sm:$0x8] %vm96_vm4, %v355_v3 }
  0x24   :  { %101 = vst.msk [vmem:[#allocation7 + $0x41] sm:$0x8] %vm96_vm4, %v357_v4  ;;  %102 = vst.msk [vmem:[#allocation7 + $0x51] sm:$0x8] %vm96_vm4, %v359_v5 }
  0x25   :  { %106 = vst.msk [vmem:[#allocation7 + $0x3] sm:$0x4] %vm105_vm5, %v343_v0  ;;  %107 = vst.msk [vmem:[#allocation7 + $0x13] sm:$0x4] %vm105_vm5, %v345_v1 }
  0x26   :  { %108 = vst.msk [vmem:[#allocation7 + $0x23] sm:$0x4] %vm105_vm5, %v347_v2  ;;  %109 = vst.msk [vmem:[#allocation7 + $0x33] sm:$0x4] %vm105_vm5, %v355_v3 }
  0x27   :  { %110 = vst.msk [vmem:[#allocation7 + $0x43] sm:$0x4] %vm105_vm5, %v357_v4  ;;  %111 = vst.msk [vmem:[#allocation7 + $0x53] sm:$0x4] %vm105_vm5, %v359_v5 }
  0x28   :  { %68 = vst.msk [vmem:[#allocation7 + $0x69] sm:$0x80] %vm60_vm0, %v59_v7  ;;  %132 = vst.msk [vmem:[#allocation7 + $0x1] sm:$0x80] %vm60_vm0, %v44_v8 }
  0x29   :  { %76 = vst.msk [vmem:[#allocation7 + $0x5b] sm:$0x40] %vm69_vm1, %v57_v6  ;;  %77 = vst.msk [vmem:[#allocation7 + $0x6b] sm:$0x40] %vm69_vm1, %v59_v7 }
  0x2a   :  { %85 = vst.msk [vmem:[#allocation7 + $0x5d] sm:$0x20] %vm78_vm2, %v57_v6  ;;  %86 = vst.msk [vmem:[#allocation7 + $0x6d] sm:$0x20] %vm78_vm2, %v59_v7 }
  0x2b   :  { %94 = vst.msk [vmem:[#allocation7 + $0x5f] sm:$0x10] %vm87_vm3, %v57_v6  ;;  %95 = vst.msk [vmem:[#allocation7 + $0x6f] sm:$0x10] %vm87_vm3, %v59_v7 }
  0x2c   :  { %103 = vst.msk [vmem:[#allocation7 + $0x61] sm:$0x8] %vm96_vm4, %v57_v6  ;;  %104 = vst.msk [vmem:[#allocation7 + $0x71] sm:$0x8] %vm96_vm4, %v59_v7 }
  0x2d   :  { %112 = vst.msk [vmem:[#allocation7 + $0x63] sm:$0x4] %vm105_vm5, %v57_v6  ;;  %113 = vst.msk [vmem:[#allocation7 + $0x73] sm:$0x4] %vm105_vm5, %v59_v7 }
  0x2e   :  { %115 = vst.msk [vmem:[#allocation7 + $0x5] sm:$0x2] %vm114_vm6, %v343_v0  ;;  %116 = vst.msk [vmem:[#allocation7 + $0x15] sm:$0x2] %vm114_vm6, %v345_v1 }
  0x2f   :  { %117 = vst.msk [vmem:[#allocation7 + $0x25] sm:$0x2] %vm114_vm6, %v347_v2  ;;  %118 = vst.msk [vmem:[#allocation7 + $0x35] sm:$0x2] %vm114_vm6, %v355_v3 }
  0x30   :  { %119 = vst.msk [vmem:[#allocation7 + $0x45] sm:$0x2] %vm114_vm6, %v357_v4  ;;  %120 = vst.msk [vmem:[#allocation7 + $0x55] sm:$0x2] %vm114_vm6, %v359_v5 }
  0x31   :  { %121 = vst.msk [vmem:[#allocation7 + $0x65] sm:$0x2] %vm114_vm6, %v57_v6  ;;  %122 = vst.msk [vmem:[#allocation7 + $0x75] sm:$0x2] %vm114_vm6, %v59_v7 }
  0x32   :  { %124 = vst.msk [vmem:[#allocation7 + $0x7] sm:$0x1] %vm123_vm7, %v343_v0  ;;  %125 = vst.msk [vmem:[#allocation7 + $0x17] sm:$0x1] %vm123_vm7, %v345_v1 }
  0x33   :  { %126 = vst.msk [vmem:[#allocation7 + $0x27] sm:$0x1] %vm123_vm7, %v347_v2  ;;  %127 = vst.msk [vmem:[#allocation7 + $0x37] sm:$0x1] %vm123_vm7, %v355_v3 }
  0x34   :  { %128 = vst.msk [vmem:[#allocation7 + $0x47] sm:$0x1] %vm123_vm7, %v357_v4  ;;  %129 = vst.msk [vmem:[#allocation7 + $0x57] sm:$0x1] %vm123_vm7, %v359_v5 }
  0x35   :  { %130 = vst.msk [vmem:[#allocation7 + $0x67] sm:$0x1] %vm123_vm7, %v57_v6  ;;  %131 = vst.msk [vmem:[#allocation7 + $0x77] sm:$0x1] %vm123_vm7, %v59_v7 }
  0x36   :  { %140 = vst.msk [vmem:[#allocation7 + $0x3] sm:$0x40] %vm69_vm1, %v44_v8  ;;  %141 = vst.msk [vmem:[#allocation7 + $0x13] sm:$0x40] %vm69_vm1, %v46_v9 }
  0x37   :  { %148 = vst.msk [vmem:[#allocation7 + $0x5] sm:$0x20] %vm78_vm2, %v44_v8  ;;  %149 = vst.msk [vmem:[#allocation7 + $0x15] sm:$0x20] %vm78_vm2, %v46_v9 }
  0x38   :  { %156 = vst.msk [vmem:[#allocation7 + $0x7] sm:$0x10] %vm87_vm3, %v44_v8  ;;  %157 = vst.msk [vmem:[#allocation7 + $0x17] sm:$0x10] %vm87_vm3, %v46_v9 }
  0x39   :  { %164 = vst.msk [vmem:[#allocation7 + $0x9] sm:$0x8] %vm96_vm4, %v44_v8  ;;  %165 = vst.msk [vmem:[#allocation7 + $0x19] sm:$0x8] %vm96_vm4, %v46_v9 }
  0x3a   :  { %172 = vst.msk [vmem:[#allocation7 + $0xb] sm:$0x4] %vm105_vm5, %v44_v8  ;;  %173 = vst.msk [vmem:[#allocation7 + $0x1b] sm:$0x4] %vm105_vm5, %v46_v9 }
  0x3b   :  { %180 = vst.msk [vmem:[#allocation7 + $0xd] sm:$0x2] %vm114_vm6, %v44_v8  ;;  %181 = vst.msk [vmem:[#allocation7 + $0x1d] sm:$0x2] %vm114_vm6, %v46_v9 }
  0x3c   :  { %188 = vst.msk [vmem:[#allocation7 + $0xf] sm:$0x1] %vm123_vm7, %v44_v8  ;;  %189 = vst.msk [vmem:[#allocation7 + $0x1f] sm:$0x1] %vm123_vm7, %v46_v9 }
  0x3d   :  { %133 = vst.msk [vmem:[#allocation7 + $0x11] sm:$0x80] %vm60_vm0, %v46_v9  ;;  %134 = vst.msk [vmem:[#allocation7 + $0x21] sm:$0x80] %vm60_vm0, %v48_v10 }
  0x3e   :  { %142 = vst.msk [vmem:[#allocation7 + $0x23] sm:$0x40] %vm69_vm1, %v48_v10  ;;  %143 = vst.msk [vmem:[#allocation7 + $0x33] sm:$0x40] %vm69_vm1, %v50_v11 }
  0x3f   :  { %150 = vst.msk [vmem:[#allocation7 + $0x25] sm:$0x20] %vm78_vm2, %v48_v10  ;;  %151 = vst.msk [vmem:[#allocation7 + $0x35] sm:$0x20] %vm78_vm2, %v50_v11 }
  0x40   :  { %158 = vst.msk [vmem:[#allocation7 + $0x27] sm:$0x10] %vm87_vm3, %v48_v10  ;;  %159 = vst.msk [vmem:[#allocation7 + $0x37] sm:$0x10] %vm87_vm3, %v50_v11 }
  0x41   :  { %166 = vst.msk [vmem:[#allocation7 + $0x29] sm:$0x8] %vm96_vm4, %v48_v10  ;;  %167 = vst.msk [vmem:[#allocation7 + $0x39] sm:$0x8] %vm96_vm4, %v50_v11 }
  0x42   :  { %174 = vst.msk [vmem:[#allocation7 + $0x2b] sm:$0x4] %vm105_vm5, %v48_v10  ;;  %175 = vst.msk [vmem:[#allocation7 + $0x3b] sm:$0x4] %vm105_vm5, %v50_v11 }
  0x43   :  { %182 = vst.msk [vmem:[#allocation7 + $0x2d] sm:$0x2] %vm114_vm6, %v48_v10  ;;  %183 = vst.msk [vmem:[#allocation7 + $0x3d] sm:$0x2] %vm114_vm6, %v50_v11 }
  0x44   :  { %190 = vst.msk [vmem:[#allocation7 + $0x2f] sm:$0x1] %vm123_vm7, %v48_v10  ;;  %191 = vst.msk [vmem:[#allocation7 + $0x3f] sm:$0x1] %vm123_vm7, %v50_v11 }
  0x45   :  { %135 = vst.msk [vmem:[#allocation7 + $0x31] sm:$0x80] %vm60_vm0, %v50_v11  ;;  %136 = vst.msk [vmem:[#allocation7 + $0x41] sm:$0x80] %vm60_vm0, %v52_v12 }
  0x46   :  { %144 = vst.msk [vmem:[#allocation7 + $0x43] sm:$0x40] %vm69_vm1, %v52_v12  ;;  %145 = vst.msk [vmem:[#allocation7 + $0x53] sm:$0x40] %vm69_vm1, %v54_v13 }
  0x47   :  { %152 = vst.msk [vmem:[#allocation7 + $0x45] sm:$0x20] %vm78_vm2, %v52_v12  ;;  %153 = vst.msk [vmem:[#allocation7 + $0x55] sm:$0x20] %vm78_vm2, %v54_v13 }
  0x48   :  { %160 = vst.msk [vmem:[#allocation7 + $0x47] sm:$0x10] %vm87_vm3, %v52_v12  ;;  %161 = vst.msk [vmem:[#allocation7 + $0x57] sm:$0x10] %vm87_vm3, %v54_v13 }
  0x49   :  { %168 = vst.msk [vmem:[#allocation7 + $0x49] sm:$0x8] %vm96_vm4, %v52_v12  ;;  %169 = vst.msk [vmem:[#allocation7 + $0x59] sm:$0x8] %vm96_vm4, %v54_v13 }
  0x4a   :  { %176 = vst.msk [vmem:[#allocation7 + $0x4b] sm:$0x4] %vm105_vm5, %v52_v12  ;;  %177 = vst.msk [vmem:[#allocation7 + $0x5b] sm:$0x4] %vm105_vm5, %v54_v13 }
  0x4b   :  { %184 = vst.msk [vmem:[#allocation7 + $0x4d] sm:$0x2] %vm114_vm6, %v52_v12  ;;  %185 = vst.msk [vmem:[#allocation7 + $0x5d] sm:$0x2] %vm114_vm6, %v54_v13 }
  0x4c   :  { %192 = vst.msk [vmem:[#allocation7 + $0x4f] sm:$0x1] %vm123_vm7, %v52_v12  ;;  %193 = vst.msk [vmem:[#allocation7 + $0x5f] sm:$0x1] %vm123_vm7, %v54_v13 }
  0x4d   :  { %137 = vst.msk [vmem:[#allocation7 + $0x51] sm:$0x80] %vm60_vm0, %v54_v13  ;;  %138 = vst.msk [vmem:[#allocation7 + $0x61] sm:$0x80] %vm60_vm0, %v56_v14 }
  0x4e   :  { %146 = vst.msk [vmem:[#allocation7 + $0x63] sm:$0x40] %vm69_vm1, %v56_v14  ;;  %147 = vst.msk [vmem:[#allocation7 + $0x73] sm:$0x40] %vm69_vm1, %v58_v15 }
  0x4f   :  { %154 = vst.msk [vmem:[#allocation7 + $0x65] sm:$0x20] %vm78_vm2, %v56_v14  ;;  %155 = vst.msk [vmem:[#allocation7 + $0x75] sm:$0x20] %vm78_vm2, %v58_v15 }
  0x50   :  { %162 = vst.msk [vmem:[#allocation7 + $0x67] sm:$0x10] %vm87_vm3, %v56_v14  ;;  %163 = vst.msk [vmem:[#allocation7 + $0x77] sm:$0x10] %vm87_vm3, %v58_v15 }
  0x51   :  { %170 = vst.msk [vmem:[#allocation7 + $0x69] sm:$0x8] %vm96_vm4, %v56_v14  ;;  %171 = vst.msk [vmem:[#allocation7 + $0x79] sm:$0x8] %vm96_vm4, %v58_v15 }
  0x52   :  { %178 = vst.msk [vmem:[#allocation7 + $0x6b] sm:$0x4] %vm105_vm5, %v56_v14  ;;  %179 = vst.msk [vmem:[#allocation7 + $0x7b] sm:$0x4] %vm105_vm5, %v58_v15 }
  0x53   :  { %186 = vst.msk [vmem:[#allocation7 + $0x6d] sm:$0x2] %vm114_vm6, %v56_v14  ;;  %187 = vst.msk [vmem:[#allocation7 + $0x7d] sm:$0x2] %vm114_vm6, %v58_v15 }
  0x54   :  { %194 = vst.msk [vmem:[#allocation7 + $0x6f] sm:$0x1] %vm123_vm7, %v56_v14  ;;  %195 = vst.msk [vmem:[#allocation7 + $0x7f] sm:$0x1] %vm123_vm7, %v58_v15 }
  0x55   :  { %139 = vst.msk [vmem:[#allocation7 + $0x71] sm:$0x80] %vm60_vm0, %v58_v15 }
  0x56 PF:  { %p253_p9 = scmp.ne.s32.totalorder %s565_s0, 0 }
  0x57   :  { %v200_v16 = vld [vmem:[#allocation4] sm:$0xff] (!%p253_p9)  ;;  %vm216_vm8 = vcmask (!%p253_p9), 130048   ;;  %v201_v17 = vld [vmem:[#allocation4 + $0x8] sm:$0xff] (!%p253_p9)  ;;  %v202_v18 = vld [vmem:[#allocation4 + $0x10] sm:$0xff] (!%p253_p9) }
  0x58   :  { %199 = sbr.rel (%p253_p9) target bundleno = 96 (0x60), region = 17  ;;  %217 = vst.msk [vmem:[#allocation7] sm:$0xff] (!%p253_p9), %vm216_vm8, %v200_v16  ;;  %218 = vst.msk [vmem:[#allocation7 + $0x8] sm:$0xff] (!%p253_p9), %vm216_vm8, %v201_v17  ;;  %v203_v19 = vld [vmem:[#allocation4 + $0x18] sm:$0xff] (!%p253_p9)  ;;  %v204_v20 = vld [vmem:[#allocation4 + $0x20] sm:$0xff] (!%p253_p9) }
  0x59   :  { %219 = vst.msk [vmem:[#allocation7 + $0x10] sm:$0xff] (!%p253_p9), %vm216_vm8, %v202_v18  ;;  %v205_v21 = vld [vmem:[#allocation4 + $0x28] sm:$0xff] (!%p253_p9)  ;;  %220 = vst.msk [vmem:[#allocation7 + $0x18] sm:$0xff] (!%p253_p9), %vm216_vm8, %v203_v19  ;;  %v206_v22 = vld [vmem:[#allocation4 + $0x30] sm:$0xff] (!%p253_p9) }
  0x5a   :  { %221 = vst.msk [vmem:[#allocation7 + $0x20] sm:$0xff] (!%p253_p9), %vm216_vm8, %v204_v20  ;;  %222 = vst.msk [vmem:[#allocation7 + $0x28] sm:$0xff] (!%p253_p9), %vm216_vm8, %v205_v21  ;;  %v207_v23 = vld [vmem:[#allocation4 + $0x38] sm:$0xff] (!%p253_p9)  ;;  %v208_v24 = vld [vmem:[#allocation4 + $0x40] sm:$0xff] (!%p253_p9) }
  0x5b   :  { %223 = vst.msk [vmem:[#allocation7 + $0x30] sm:$0xff] (!%p253_p9), %vm216_vm8, %v206_v22  ;;  %224 = vst.msk [vmem:[#allocation7 + $0x38] sm:$0xff] (!%p253_p9), %vm216_vm8, %v207_v23  ;;  %v209_v25 = vld [vmem:[#allocation4 + $0x48] sm:$0xff] (!%p253_p9)  ;;  %v210_v26 = vld [vmem:[#allocation4 + $0x50] sm:$0xff] (!%p253_p9) }
  0x5c   :  { %225 = vst.msk [vmem:[#allocation7 + $0x40] sm:$0xff] (!%p253_p9), %vm216_vm8, %v208_v24  ;;  %v211_v27 = vld [vmem:[#allocation4 + $0x58] sm:$0xff] (!%p253_p9)  ;;  %226 = vst.msk [vmem:[#allocation7 + $0x48] sm:$0xff] (!%p253_p9), %vm216_vm8, %v209_v25  ;;  %v212_v28 = vld [vmem:[#allocation4 + $0x60] sm:$0xff] (!%p253_p9) }
  0x5d   :  { %227 = vst.msk [vmem:[#allocation7 + $0x50] sm:$0xff] (!%p253_p9), %vm216_vm8, %v210_v26  ;;  %228 = vst.msk [vmem:[#allocation7 + $0x58] sm:$0xff] (!%p253_p9), %vm216_vm8, %v211_v27  ;;  %v213_v29 = vld [vmem:[#allocation4 + $0x68] sm:$0xff] (!%p253_p9)  ;;  %v214_v30 = vld [vmem:[#allocation4 + $0x70] sm:$0xff] (!%p253_p9) }
  0x5e   :  { %229 = vst.msk [vmem:[#allocation7 + $0x60] sm:$0xff] (!%p253_p9), %vm216_vm8, %v212_v28  ;;  %230 = vst.msk [vmem:[#allocation7 + $0x68] sm:$0xff] (!%p253_p9), %vm216_vm8, %v213_v29  ;;  %v215_v31 = vld [vmem:[#allocation4 + $0x78] sm:$0xff] (!%p253_p9) }
  0x5f   :  { %231 = vst.msk [vmem:[#allocation7 + $0x70] sm:$0xff] %vm216_vm8, %v214_v30  ;;  %232 = vst.msk [vmem:[#allocation7 + $0x78] sm:$0xff] %vm216_vm8, %v215_v31 }
  0x60 PF:  { %s309_s0 = smov [#allocation7]  }
  0x61   :  { %s238_s26 = sshll.u32 %s309_s0, 4  ;;  %s239_s26 = int_to_ptr.vmem [resolvable:$true] %s238_s26 }
  0x62   :  { %s280_s27 = scalar_lea.vmem %s239_s26, 2048  ;;  %p285_p11 = scmp.lt.s32.totalorder %s239_s26, %s239_s26 }
  0x63   :  { %p281_p10 = scmp.ne.s32.totalorder %s239_s26, %s280_s27  ;;  %p286_p12 = scmp.lt.s32.totalorder %s280_s27, %s280_s27 }
  0x65   :  { %p287_p13 = por %p286_p12, %p285_p11 }
  0x67   :  { %p288_p0 = pnand %p287_p13, %p281_p10 }
  0x69   :  { %291 = shalt.err (!%p288_p0)
}
  0x6a   :  { %s292_s30 = scalar_lea.hbm %s567_s2, 2048 }
  0x6b   :  { %p293_p1 = scmp.ne.s32.totalorder %s567_s2, %s292_s30  ;;  %p296_p2 = scmp.lt.u32.totalorder %s292_s30, %s567_s2 }
  0x6d   :  { %p298_p3 = pnand %p296_p2, %p293_p1 }
  0x6f   :  { %301 = shalt.err (!%p298_p3)
}
  0x70   :  { %244 = dma.vmem_to_hbm [thread:$0]  %s239_s26, 2048, %s567_s2, [#allocation6], %s307_s19, %s307_s19, %s308_s20  }
  0x71   :  { %304 = dma.done.wait [#allocation6], 2048  }
  0x72   :  { %305 = vsyncadd [#allocation6], 4294965248 }
  0x73   :  { %248 = vsyncpa [#allocation5], 1 }
  0x74   :  { %249 = vsyncpa [#allocation6], 1 }

</bundles_post_ra>
